<compile_context>
chip_gen: v6e
topology: v6e:2x2x1
jax: 0.10.0
libtpu: 0.0.40
codegen_flags: <defaults>
</compile_context>

<pallas_src>
import jax
import jax.numpy as jnp
from jax.experimental import pallas as pl
from jax.experimental.pallas import tpu as pltpu

# ---------------- sizes (small, consistent with the module) ----------------
B = 8             # batch
G = 4             # graphs per batch element (summed over, like .sum(dim=0))
G_OUT = 32        # g_output_dim  -> graph_feats dim = 2 * G_OUT
MLP_OUT = 32      # mlp_out_size
S_OUT = 32        # s_output_dim
D_TOT = 2 * G_OUT + MLP_OUT + S_OUT        # 128 : input dim of predict head
H = 64            # predict_hidden_dim
HP = 128          # hidden / output dim padded to a full lane width
D1 = 2 * G * G_OUT + MLP_OUT + S_OUT       # 320 : expanded K with graph sum folded in


def uam_kernel(x_ref, w_ref, b_ref, a_ref, out_ref):
    """Fused 3-layer predict MLP on a packed weight slab.

    x_ref:   [B, D1]          bf16  (graph-axis sum already folded into K)
    w_ref:   [D1+2*HP, HP]    bf16  rows 0:D1 = W1 (expanded), D1:D1+HP = W2, rest = W3
    b_ref:   [8, HP]          f32   rows 0/1/2 = b1/b2/b3 (zero-padded to 128 lanes)
    a_ref:   [2]              f32   SMEM: PReLU slopes a1, a2
    out_ref: [B, HP]          f32   columns 0/1 are mean/logvar, rest zero-padding
    """
    a1 = a_ref[0]
    a2 = a_ref[1]

    # Layer 1: single lane-dense K=D1 matmul (replaces graph sum + 4 split dots).
    h = jnp.dot(x_ref[...], w_ref[0:D1, :],
                preferred_element_type=jnp.float32) + b_ref[0:1, :]
    h = jnp.where(h > 0.0, h, a1 * h)        # PReLU; Dropout = identity (eval mode)

    # Layer 2.
    h = jnp.dot(h.astype(jnp.bfloat16), w_ref[D1:D1 + HP, :],
                preferred_element_type=jnp.float32) + b_ref[1:2, :]
    h = jnp.where(h > 0.0, h, a2 * h)

    # Layer 3: output padded 2 -> 128 lanes so the store is unmasked / lane-dense.
    out = jnp.dot(h.astype(jnp.bfloat16), w_ref[D1 + HP:D1 + 2 * HP, :],
                  preferred_element_type=jnp.float32) + b_ref[2:3, :]
    out_ref[...] = out.astype(out_ref.dtype)


def init_params(key):
    """PyTorch-layout parameters of the `predict` head (nn.Linear / nn.PReLU)."""
    ks = jax.random.split(key, 6)
    scale = 0.05
    return {
        "w1": (scale * jax.random.normal(ks[0], (D_TOT, H))).astype(jnp.float32),
        "b1": (scale * jax.random.normal(ks[1], (1, H))).astype(jnp.float32),
        "a1": jnp.full((1, 1), 0.25, jnp.float32),   # nn.PReLU() default init
        "w2": (scale * jax.random.normal(ks[2], (H, H))).astype(jnp.float32),
        "b2": (scale * jax.random.normal(ks[3], (1, H))).astype(jnp.float32),
        "a2": jnp.full((1, 1), 0.25, jnp.float32),
        "w3": (scale * jax.random.normal(ks[4], (H, 2))).astype(jnp.float32),
        "b3": (scale * jax.random.normal(ks[5], (1, 2))).astype(jnp.float32),
    }


def prepare_params(params):
    """One-time packing: expand graph-sum rows, pad to 128 lanes, fuse into one slab."""
    w1 = params["w1"]
    # sum_g x[b,g,:] @ W_block  ==  x.reshape(B, G*G_OUT)[b,:] @ tile(W_block, (G,1))
    w1_exp = jnp.concatenate(
        [jnp.tile(w1[0:G_OUT], (G, 1)),                  # reactant block, expanded
         jnp.tile(w1[G_OUT:2 * G_OUT], (G, 1)),          # product block, expanded
         w1[2 * G_OUT:2 * G_OUT + MLP_OUT],              # mlp-feature block
         w1[2 * G_OUT + MLP_OUT:D_TOT]],                 # seq-feature block
        axis=0)                                          # [D1, H]

    def pad_cols(w):
        return jnp.pad(w, ((0, 0), (0, HP - w.shape[1])))

    def pad_rows(w, n):
        return jnp.pad(w, ((0, n - w.shape[0]), (0, 0)))

    w_slab = jnp.concatenate(
        [pad_cols(w1_exp),                               # [D1, 128]
         pad_rows(pad_cols(params["w2"]), HP),           # [128, 128]
         pad_rows(pad_cols(params["w3"]), HP)],          # [128, 128]
        axis=0).astype(jnp.bfloat16)                     # [576, 128] bf16

    b_slab = jnp.zeros((8, HP), jnp.float32)
    b_slab = b_slab.at[0, :H].set(params["b1"][0])
    b_slab = b_slab.at[1, :H].set(params["b2"][0])
    b_slab = b_slab.at[2, :2].set(params["b3"][0])

    a_vec = jnp.array([params["a1"][0, 0], params["a2"][0, 0]], jnp.float32)
    return w_slab, b_slab, a_vec


def uam_forward(react_enc, prod_enc, mlp_feats, seq_feats, a_loss, prepared):
    """Returns (mean, logvar, a_loss) exactly like UAM.forward."""
    w_slab, b_slab, a_vec = prepared
    b = react_enc.shape[0]
    # Fold the graph-axis sum into K and build one lane-dense [B, 320] operand.
    x = jnp.concatenate(
        [react_enc.reshape(b, G * G_OUT),
         prod_enc.reshape(b, G * G_OUT),
         mlp_feats, seq_feats], axis=1).astype(jnp.bfloat16)

    vmem = pl.BlockSpec(memory_space=pltpu.MemorySpace.VMEM)
    smem = pl.BlockSpec(memory_space=pltpu.MemorySpace.SMEM)

    flops = 2 * b * (D1 * HP + HP * HP + HP * HP)
    bytes_accessed = (b * D1 * 2 + (D1 + 2 * HP) * HP * 2
                      + 8 * HP * 4 + 2 * 4 + b * HP * 4)

    out = pl.pallas_call(
        uam_kernel,
        out_shape=jax.ShapeDtypeStruct((b, HP), jnp.float32),
        in_specs=[vmem, vmem, vmem, smem],
        out_specs=vmem,
        cost_estimate=pl.CostEstimate(flops=flops, transcendentals=0,
                                      bytes_accessed=bytes_accessed),
    )(x, w_slab, b_slab, a_vec)

    mean = out[:, 0]
    logvar = out[:, 1]
    return mean, logvar, a_loss


def reference_forward(react_enc, prod_enc, mlp_feats, seq_feats, params):
    """Pure-JAX f32 reference with the original module's math (for correctness)."""
    gfeat = jnp.concatenate(
        [jnp.sum(react_enc, axis=1), jnp.sum(prod_enc, axis=1)], axis=1)
    x = jnp.concatenate([gfeat, mlp_feats, seq_feats], axis=1)

    def prelu(v, a):
        return jnp.where(v > 0.0, v, a * v)

    h = prelu(x @ params["w1"] + params["b1"], params["a1"][0, 0])
    h = prelu(h @ params["w2"] + params["b2"], params["a2"][0, 0])
    out = h @ params["w3"] + params["b3"]
    return out[:, 0], out[:, 1]


if __name__ == "__main__":
    key = jax.random.PRNGKey(0)
    k_r, k_p, k_m, k_s, k_w = jax.random.split(key, 5)

    # Stand-ins for the (undefined) sub-encoder outputs.
    react_enc = jax.random.normal(k_r, (B, G, G_OUT), jnp.float32)
    prod_enc = jax.random.normal(k_p, (B, G, G_OUT), jnp.float32)
    mlp_feats = jax.random.normal(k_m, (B, MLP_OUT), jnp.float32)
    seq_feats = jax.random.normal(k_s, (B, S_OUT), jnp.float32)
    a_loss = jnp.float32(0.0)  # auxiliary loss from Fea_Encoder (pass-through)

    params = init_params(k_w)
    prepared = prepare_params(params)   # one-time expansion / padding / bf16 cast

    mean, logvar, aux = uam_forward(react_enc, prod_enc, mlp_feats, seq_feats,
                                    a_loss, prepared)
    jax.block_until_ready((mean, logvar, aux))

    ref_mean, ref_logvar = reference_forward(react_enc, prod_enc, mlp_feats,
                                             seq_feats, params)
    assert mean.shape == (B,) and logvar.shape == (B,)
    # bf16 matmul operands with f32 accumulation vs. a pure-f32 reference.
    assert jnp.allclose(mean, ref_mean, atol=2e-2, rtol=2e-2)
    assert jnp.allclose(logvar, ref_logvar, atol=2e-2, rtol=2e-2)

    print("KERNEL_OK")
</pallas_src>

<mosaic_0001>
module attributes {stable_mosaic.version = 11 : i64} {
  func.func @uam_kernel(%arg0: memref<8x320xbf16, #tpu.memory_space<vmem>>, %arg1: memref<576x128xbf16, #tpu.memory_space<vmem>>, %arg2: memref<8x128xf32, #tpu.memory_space<vmem>>, %arg3: memref<2xf32, #tpu.memory_space<smem>>, %arg4: memref<8x128xf32, #tpu.memory_space<vmem>>) attributes {dimension_semantics = [], scalar_prefetch = 0 : i64, scratch_operands = 0 : i64, tpu.core_type = #tpu.core_type<tc>} {
    %c0 = arith.constant 0 : index
    %0 = memref.load %arg3[%c0] : memref<2xf32, #tpu.memory_space<smem>>
    %c1 = arith.constant 1 : index
    %1 = memref.load %arg3[%c1] : memref<2xf32, #tpu.memory_space<smem>>
    %c0_0 = arith.constant 0 : index
    %c0_1 = arith.constant 0 : index
    %2 = vector.load %arg0[%c0_0, %c0_1] : memref<8x320xbf16, #tpu.memory_space<vmem>>, vector<8x320xbf16>
    %c0_2 = arith.constant 0 : index
    %c0_3 = arith.constant 0 : index
    %3 = vector.load %arg1[%c0_2, %c0_3] : memref<576x128xbf16, #tpu.memory_space<vmem>>, vector<320x128xbf16>
    %cst = arith.constant dense<0.000000e+00> : vector<8x128xf32>
    %4 = tpu.matmul %2, %3, %cst {dimension_numbers = #tpu.dot_dimension_numbers<[1], [0], [0], [1], [0, 0, 1, 1], [], []>} : vector<8x320xbf16>, vector<320x128xbf16>, vector<8x128xf32> -> vector<8x128xf32>
    %c0_4 = arith.constant 0 : index
    %c0_5 = arith.constant 0 : index
    %5 = vector.load %arg2[%c0_4, %c0_5] : memref<8x128xf32, #tpu.memory_space<vmem>>, vector<1x128xf32>
    %6 = vector.broadcast %5 : vector<1x128xf32> to vector<8x128xf32>
    %7 = arith.addf %4, %6 : vector<8x128xf32>
    %cst_6 = arith.constant 0.000000e+00 : f32
    %8 = vector.broadcast %cst_6 : f32 to vector<8x128xf32>
    %9 = arith.cmpf ogt, %7, %8 : vector<8x128xf32>
    %10 = vector.broadcast %0 : f32 to vector<8x128xf32>
    %11 = arith.mulf %10, %7 : vector<8x128xf32>
    %12 = arith.select %9, %7, %11 : vector<8x128xi1>, vector<8x128xf32>
    %13 = arith.truncf %12 : vector<8x128xf32> to vector<8x128xbf16>
    %c320 = arith.constant 320 : index
    %c0_7 = arith.constant 0 : index
    %14 = vector.load %arg1[%c320, %c0_7] : memref<576x128xbf16, #tpu.memory_space<vmem>>, vector<128x128xbf16>
    %cst_8 = arith.constant dense<0.000000e+00> : vector<8x128xf32>
    %15 = tpu.matmul %13, %14, %cst_8 {dimension_numbers = #tpu.dot_dimension_numbers<[1], [0], [0], [1], [0, 0, 1, 1], [], []>} : vector<8x128xbf16>, vector<128x128xbf16>, vector<8x128xf32> -> vector<8x128xf32>
    %c1_9 = arith.constant 1 : index
    %c0_10 = arith.constant 0 : index
    %16 = vector.load %arg2[%c1_9, %c0_10] : memref<8x128xf32, #tpu.memory_space<vmem>>, vector<1x128xf32>
    %17 = vector.broadcast %16 : vector<1x128xf32> to vector<8x128xf32>
    %18 = arith.addf %15, %17 : vector<8x128xf32>
    %cst_11 = arith.constant 0.000000e+00 : f32
    %19 = vector.broadcast %cst_11 : f32 to vector<8x128xf32>
    %20 = arith.cmpf ogt, %18, %19 : vector<8x128xf32>
    %21 = vector.broadcast %1 : f32 to vector<8x128xf32>
    %22 = arith.mulf %21, %18 : vector<8x128xf32>
    %23 = arith.select %20, %18, %22 : vector<8x128xi1>, vector<8x128xf32>
    %24 = arith.truncf %23 : vector<8x128xf32> to vector<8x128xbf16>
    %c448 = arith.constant 448 : index
    %c0_12 = arith.constant 0 : index
    %25 = vector.load %arg1[%c448, %c0_12] : memref<576x128xbf16, #tpu.memory_space<vmem>>, vector<128x128xbf16>
    %cst_13 = arith.constant dense<0.000000e+00> : vector<8x128xf32>
    %26 = tpu.matmul %24, %25, %cst_13 {dimension_numbers = #tpu.dot_dimension_numbers<[1], [0], [0], [1], [0, 0, 1, 1], [], []>} : vector<8x128xbf16>, vector<128x128xbf16>, vector<8x128xf32> -> vector<8x128xf32>
    %c2 = arith.constant 2 : index
    %c0_14 = arith.constant 0 : index
    %27 = vector.load %arg2[%c2, %c0_14] : memref<8x128xf32, #tpu.memory_space<vmem>>, vector<1x128xf32>
    %28 = vector.broadcast %27 : vector<1x128xf32> to vector<8x128xf32>
    %29 = arith.addf %26, %28 : vector<8x128xf32>
    %c0_15 = arith.constant 0 : index
    %c0_16 = arith.constant 0 : index
    %30 = vector.load %arg4[%c0_15, %c0_16] : memref<8x128xf32, #tpu.memory_space<vmem>>, vector<8x128xf32>
    tpu.vector_store %arg4[%c0_15, %c0_16], %29 {strides = array<i32>} : memref<8x128xf32, #tpu.memory_space<vmem>>, vector<8x128xf32>,
    return
  }
}

</mosaic_0001>

<bundles_post_ra>
// kernel: tpu_custom_call.1
= control target key start
LH: loop header
LB: loop body
LE: loop exit
PB: predicated region body
PF: predicated region fallthrough
CT: control target
= control target key end

     0   :  { %9 = vsyncpa [#allocation3], 0  ;;  %s942_s0 = inlined_call_operand.hbm [shape: bf16[8,320], index: 0, kind: input, shape index: {}]   ;;  %s943_s1 = inlined_call_operand.hbm [shape: bf16[576,128], index: 1, kind: input, shape index: {}]   ;;  %s944_s2 = inlined_call_operand.hbm [shape: f32[8,128], index: 2, kind: input, shape index: {}]   ;;  %s945_s3 = inlined_call_operand.vmem [shape: f32[2], index: 3, kind: input, shape index: {}]   ;;  %s946_s4 = inlined_call_operand.hbm [shape: f32[8,128], index: 4, kind: output, shape index: {}]  }
   0x1   :  { %10 = vsyncpa [#allocation7], 0 }
   0x2   :  { %11 = vsyncpa [#allocation5], 0 }
   0x3   :  { %12 = vsyncpa [#allocation4], 0  ;;  %s867_s15 = smov [#allocation6]  }
   0x4   :  { %s28_s16 = sshll.u32 %s867_s15, 4  ;;  %s29_s16 = int_to_ptr.vmem [resolvable:$true] %s28_s16 }
   0x5   :  { %s775_s17 = scalar_lea.vmem %s29_s16, 4608  ;;  %p780_p1 = scmp.lt.s32.totalorder %s29_s16, %s29_s16 }
   0x6   :  { %p776_p0 = scmp.ne.s32.totalorder %s29_s16, %s775_s17  ;;  %p781_p2 = scmp.lt.s32.totalorder %s775_s17, %s775_s17 }
   0x8   :  { %p782_p3 = por %p781_p2, %p780_p1 }
   0xa   :  { %p783_p4 = pnand %p782_p3, %p776_p0 }
   0xc   :  { %786 = shalt.err (!%p783_p4)
}
   0xd   :  { %s868_s18 = smov 64   ;;  %s869_s19 = smov 4  }
   0xe   :  { %34 = dma.hbm_to_vmem [thread:$0]  %s943_s1, 4608, %s29_s16, [#allocation7], %s868_s18, %s868_s18, %s869_s19  }
   0xf   :  { %s870_s22 = smov [#allocation2]   ;;  %s871_s24 = smov [#allocation8]  }
  0x10   :  { %s19_s23 = sshll.u32 %s870_s22, 4  ;;  %s41_s25 = sshll.u32 %s871_s24, 4  ;;  %s20_s23 = int_to_ptr.vmem [resolvable:$true] %s19_s23  ;;  %s42_s25 = int_to_ptr.vmem [resolvable:$true] %s41_s25 }
  0x11   :  { %s795_s26 = scalar_lea.vmem %s20_s23, 192  ;;  %p800_p6 = scmp.lt.s32.totalorder %s20_s23, %s20_s23 }
  0x12   :  { %p796_p5 = scmp.ne.s32.totalorder %s20_s23, %s795_s26  ;;  %p801_p7 = scmp.lt.s32.totalorder %s795_s26, %s795_s26 }
  0x14   :  { %p802_p8 = por %p801_p7, %p800_p6 }
  0x16   :  { %p803_p9 = pnand %p802_p8, %p796_p5 }
  0x18   :  { %806 = shalt.err (!%p803_p9)
}
  0x19   :  { %22 = dma.hbm_to_vmem [thread:$0]  %s942_s0, 192, %s20_s23, [#allocation3]  }
  0x1a   :  { %s51_s1 = sshll.u32 %s945_s3, 4  ;;  %s815_s5 = scalar_lea.vmem %s42_s25, 128  ;;  %s52_s1 = int_to_ptr.vmem [resolvable:$true] %s51_s1 }
  0x1b   :  { %p816_p10 = scmp.ne.s32.totalorder %s42_s25, %s815_s5  ;;  %p820_p11 = scmp.lt.s32.totalorder %s42_s25, %s42_s25 }
  0x1c   :  { %p821_p12 = scmp.lt.s32.totalorder %s815_s5, %s815_s5 }
  0x1e   :  { %p822_p13 = por %p821_p12, %p820_p11 }
  0x20   :  { %p823_p0 = pnand %p822_p13, %p816_p10 }
  0x22   :  { %826 = shalt.err (!%p823_p0)
}
  0x23   :  { %44 = dma.hbm_to_vmem [thread:$0]  %s944_s2, 128, %s42_s25, [#allocation7]  }
  0x24   :  { %s827_s8 = scalar_lea.vmem %s52_s1, 16  ;;  %p832_p2 = scmp.lt.s32.totalorder %s52_s1, %s52_s1 }
  0x25   :  { %p828_p1 = scmp.ne.s32.totalorder %s52_s1, %s827_s8  ;;  %p833_p3 = scmp.lt.s32.totalorder %s827_s8, %s827_s8 }
  0x27   :  { %p834_p4 = por %p833_p3, %p832_p2 }
  0x29   :  { %p835_p5 = pnand %p834_p4, %p828_p1 }
  0x2b   :  { %838 = shalt.err (!%p835_p5)
}
  0x2c   :  { %s872_s0 = smov [#allocation9]  }
  0x2d   :  { %54 = dma.vmem_to_smem %s52_s1, 16, %s872_s0, [#allocation5]  }
  0x2e   :  { %859 = dma.done.wait [#allocation3], 192  }
  0x2f   :  { %860 = vsyncadd [#allocation3], 4294967104 }
  0x30   :  { %861 = dma.done.wait [#allocation7], 4736  }
  0x31   :  { %862 = vsyncadd [#allocation7], 4294962560 }
  0x32   :  { %863 = dma.done.wait [#allocation5], 16  }
  0x33   :  { %864 = vsyncadd [#allocation5], 4294967280 }
  0x34   :  { %67 = sfence }
  0x35   :  { %v728_v0 = vld [vmem:[#allocation6 + $0x78] sm:$0xff]   ;;  %v873_v2 = vmov 0.0   ;;  %v730_v3 = vld [vmem:[#allocation6 + $0x70] sm:$0xff]   ;;  %vm874_vm0 = vmmov 0   ;;  %v732_v5 = vld [vmem:[#allocation6 + $0x68] sm:$0xff]   ;;  %vm248_vm1 = vcmask 523264  }
  0x36   :  { %v729_v1 = vld [vmem:[#allocation6 + $0x38] sm:$0xff]   ;;  %667 = vmatprep.subr.bf16.mxu1 %v873_v2  ;;  %622 = vmatprep.subr.bf16.mxu0 %v728_v0  ;;  %v731_v4 = vld [vmem:[#allocation6 + $0x30] sm:$0xff]   ;;  %v733_v6 = vld [vmem:[#allocation6 + $0x28] sm:$0xff]   ;;  %s69_s2 = sld [smem:[#allocation9]]  ;;  %s875_s9 = smov [#allocation10]  }
  0x37   :  { %675 = vmatprep.mubr.msk.bf16.mxu1 %vm874_vm0, %v873_v2  ;;  %623 = vmatpush3.bf16.msra.mxu0 %v729_v1  ;;  %v734_v7 = vld [vmem:[#allocation6 + $0x60] sm:$0xff]   ;;  %v738_v8 = vld [vmem:[#allocation6 + $0x98] sm:$0xff]   ;;  %v741_v11 = vld [vmem:[#allocation6 + $0x90] sm:$0xff]   ;;  %s578_s3 = sld [smem:[#allocation9 + $0x1]]  ;;  %s567_s10 = sshll.u32 %s875_s9, 4  ;;  %s568_s10 = int_to_ptr.vmem [resolvable:$true] %s567_s10 }
  0x38   :  { %624 = vmatprep.subr.bf16.mxu0 %v730_v3  ;;  %v735_v9 = vld [vmem:[#allocation6 + $0x20] sm:$0xff]   ;;  %v736_v10 = vld [vmem:[#allocation6 + $0x58] sm:$0xff]   ;;  %668 = vmatpush3.bf16.msra.mxu1 %v738_v8  ;;  %v739_v13 = vld [vmem:[#allocation6 + $0x50] sm:$0xff]   ;;  %s839_s11 = scalar_lea.vmem %s568_s10, 128  ;;  %p844_p7 = scmp.lt.s32.totalorder %s568_s10, %s568_s10 }
  0x39   :  { %669 = vmatprep.subr.bf16.mxu1 %v873_v2  ;;  %v737_v12 = vld [vmem:[#allocation6 + $0x18] sm:$0xff]   ;;  %v744_v14 = vld [vmem:[#allocation6 + $0x88] sm:$0xff]   ;;  %v740_v15 = vld [vmem:[#allocation6 + $0x10] sm:$0xff]   ;;  %p840_p6 = scmp.ne.s32.totalorder %s568_s10, %s839_s11  ;;  %p845_p8 = scmp.lt.s32.totalorder %s839_s11, %s839_s11 }
  0x3a   :  { %v742_v16 = vld [vmem:[#allocation6 + $0x48] sm:$0xff]   ;;  %v747_v17 = vld [vmem:[#allocation6 + $0x80] sm:$0xff]   ;;  %v71_v18 = vld [vmem:[#allocation2] sm:$0xff] }
  0x3b   :  { %625 = vmatpush3.bf16.msra.mxu0 %v731_v4  ;;  %v743_v19 = vld [vmem:[#allocation6 + $0x8] sm:$0xff]   ;;  %v581_v20 = vcombine.high %v71_v18, %v71_v18  ;;  %v745_v21 = vld [vmem:[#allocation6 + $0x40] sm:$0xff]   ;;  %v750_v22 = vld [vmem:[#allocation2 + $0x8] ss:$0 sps:$4 sm:$0xff]   ;;  %v580_v26 = vcombine.low %v71_v18, %v71_v18  ;;  %p846_p9 = por %p845_p8, %p844_p7 }
  0x3c   :  { %626 = vmatprep.subr.bf16.mxu0 %v732_v5  ;;  %670 = vmatpush3.bf16.msra.mxu1 %v741_v11  ;;  %v751_v23 = vld [vmem:[#allocation6 + $0xd8] sm:$0xff]   ;;  %v746_v24 = vld [vmem:[#allocation6] sm:$0xff]   ;;  %v752_v25 = vld [vmem:[#allocation6 + $0xd0] sm:$0xff]   ;;  %v333_v49 = vstv %s69_s2 }
  0x3d   :  { %671 = vmatprep.subr.bf16.mxu1 %v873_v2  ;;  %284 = vmatprep.mubr.bf16.mxu0 %v581_v20  ;;  %v753_v27 = vld [vmem:[#allocation6 + $0xc8] sm:$0xff]   ;;  %v754_v28 = vld [vmem:[#allocation6 + $0xc0] sm:$0xff]   ;;  %v755_v29 = vld [vmem:[#allocation6 + $0xb8] sm:$0xff]   ;;  %v447_v59 = vstv %s578_s3  ;;  %p847_p10 = pnand %p846_p9, %p840_p6 }
  0x3e   :  { %v756_v30 = vld [vmem:[#allocation6 + $0xb0] sm:$0xff]   ;;  %v757_v31 = vld [vmem:[#allocation6 + $0xa8] sm:$0xff]   ;;  %v758_v32 = vld [vmem:[#allocation6 + $0xa0] sm:$0xff]  }
  0x3f   :  { %627 = vmatpush3.bf16.msra.mxu0 %v733_v6  ;;  %v759_v33 = vld [vmem:[#allocation6 + $0x118] sm:$0xff]   ;;  %v760_v34 = vld [vmem:[#allocation6 + $0x110] sm:$0xff]   ;;  %v761_v35 = vld [vmem:[#allocation6 + $0x108] sm:$0xff]  }
  0x40   :  { %628 = vmatprep.subr.bf16.mxu0 %v734_v7  ;;  %672 = vmatpush3.bf16.msra.mxu1 %v744_v14  ;;  %v762_v36 = vld [vmem:[#allocation6 + $0x100] sm:$0xff]   ;;  %v763_v37 = vld [vmem:[#allocation6 + $0xf8] sm:$0xff]   ;;  %v764_v38 = vld [vmem:[#allocation6 + $0xf0] sm:$0xff]  }
  0x41   :  { %673 = vmatprep.subr.bf16.mxu1 %v873_v2  ;;  %v579_v44 = vld [vmem:[#allocation8] ss:$0 sm:$0xff]  ;;  %v765_v55 = vld [vmem:[#allocation6 + $0xe8] sm:$0xff]   ;;  %v604_v57 = vld [vmem:[#allocation8 + $0x1] ss:$0 sm:$0xff] }
  0x42   :  { %v766_v56 = vld [vmem:[#allocation6 + $0xe0] sm:$0xff]  }
  0x43   :  { %629 = vmatpush3.bf16.msra.mxu0 %v735_v9  ;;  %v613_v4 = vld [vmem:[#allocation8 + $0x2] ss:$0 sm:$0xff] }
  0x44   :  { %630 = vmatprep.subr.bf16.mxu0 %v736_v10  ;;  %674 = vmatpush3.bf16.msra.mxu1 %v747_v17 }
  0x45   :  { %679 = vmatprep.subr.bf16.mxu1 %v873_v2 }
  0x47   :  { %631 = vmatpush3.bf16.msra.mxu0 %v737_v12  ;;  %676 = vmatmul.mubr.msk.bf16.vlgmr.msra.gmra.mxu1 %vm248_vm1, %v750_v22 }
  0x48   :  { %632 = vmatprep.subr.bf16.mxu0 %v739_v13  ;;  %680 = vmatpush3.bf16.msra.mxu1 %v751_v23 }
  0x49   :  { %681 = vmatprep.subr.bf16.mxu1 %v873_v2  ;;  %695 = vmatprep.mubr.msk.bf16.mxu1 %vm874_vm0, %v873_v2 }
  0x4b   :  { %633 = vmatpush3.bf16.msra.mxu0 %v740_v15 }
  0x4c   :  { %634 = vmatprep.subr.bf16.mxu0 %v742_v16  ;;  %682 = vmatpush3.bf16.msra.mxu1 %v752_v25 }
  0x4d   :  { %683 = vmatprep.subr.bf16.mxu1 %v873_v2 }
  0x4f   :  { %635 = vmatpush3.bf16.msra.mxu0 %v743_v19 }
  0x50   :  { %636 = vmatprep.subr.bf16.mxu0 %v745_v21  ;;  %684 = vmatpush3.bf16.msra.mxu1 %v753_v27 }
  0x51   :  { %685 = vmatprep.subr.bf16.mxu1 %v873_v2 }
  0x53   :  { %637 = vmatpush3.bf16.msra.mxu0 %v746_v24 }
  0x54   :  { %699 = vmatprep.subr.bf16.mxu0 %v873_v2  ;;  %686 = vmatpush3.bf16.msra.mxu1 %v754_v28 }
  0x55   :  { %687 = vmatprep.subr.bf16.mxu1 %v873_v2 }
  0x56   :  { %285 = vmatmul.mubr.bf16.vlgmr.msra.gmra.mxu0 %v580_v26 }
  0x57   :  { %715 = vmatprep.mubr.msk.bf16.mxu0 %vm874_vm0, %v873_v2  ;;  %700 = vmatpush3.bf16.msra.mxu0 %v759_v33 }
  0x58   :  { %688 = vmatpush3.bf16.msra.mxu1 %v755_v29  ;;  %701 = vmatprep.subr.bf16.mxu0 %v873_v2 }
  0x59   :  { %689 = vmatprep.subr.bf16.mxu1 %v873_v2 }
  0x5b   :  { %702 = vmatpush3.bf16.msra.mxu0 %v760_v34 }
  0x5c   :  { %690 = vmatpush3.bf16.msra.mxu1 %v756_v30  ;;  %703 = vmatprep.subr.bf16.mxu0 %v873_v2 }
  0x5d   :  { %691 = vmatprep.subr.bf16.mxu1 %v873_v2 }
  0x5f   :  { %704 = vmatpush3.bf16.msra.mxu0 %v761_v35 }
  0x60   :  { %692 = vmatpush3.bf16.msra.mxu1 %v757_v31  ;;  %705 = vmatprep.subr.bf16.mxu0 %v873_v2 }
  0x61   :  { %693 = vmatprep.subr.bf16.mxu1 %v873_v2 }
  0x63   :  { %706 = vmatpush3.bf16.msra.mxu0 %v762_v36 }
  0x64   :  { %694 = vmatpush3.bf16.msra.mxu1 %v758_v32  ;;  %707 = vmatprep.subr.bf16.mxu0 %v873_v2 }
  0x67   :  { %708 = vmatpush3.bf16.msra.mxu0 %v763_v37 }
  0x68   :  { %709 = vmatprep.subr.bf16.mxu0 %v873_v2 }
  0x6b   :  { %710 = vmatpush3.bf16.msra.mxu0 %v764_v38 }
  0x6c   :  { %711 = vmatprep.subr.bf16.mxu0 %v873_v2 }
  0x6f   :  { %712 = vmatpush3.bf16.msra.mxu0 %v765_v55 }
  0x70   :  { %713 = vmatprep.subr.bf16.mxu0 %v873_v2 }
  0x73   :  { %714 = vmatpush3.bf16.msra.mxu0 %v766_v56 }
 0x107   :  { %v326_v39 = vpop.f32.mrf.mxu1 }
 0x109   :  { %v677_v40 = vpop.f32.mrf.mxu1 }
 0x10b   :  { %v329_v41 = vpop.f32.mrf.mxu1 }
 0x10d   :  { %v678_v42 = vpop.f32.mrf.mxu1 }
 0x116   :  { %v638_v43 = vpop.f32.mrf.mxu0 }
 0x118   :  { %v639_v45 = vpop.f32.mrf.mxu0 }
 0x119   :  { %v640_v46 = vadd.f32 %v639_v45, %v638_v43 }
 0x11a   :  { %v641_v47 = vpop.f32.mrf.mxu0 }
 0x11b   :  { %v287_v48 = vadd.f32 %v640_v46, %v579_v44 }
 0x11c   :  { %v642_v50 = vpop.f32.mrf.mxu0 }
 0x11d   :  { %v327_v51 = vadd.f32 %v326_v39, %v287_v48 }
 0x11f   :  { %vm332_vm2 = vcmp.gt.f32.partialorder %v327_v51, 0.0  ;;  %v334_v52 = vmul.f32 %v333_v49, %v327_v51 }
 0x121   :  { %v335_v53 = vsel %vm332_vm2, %v327_v51, %v334_v52 }
 0x122   :  { %v336_v54 = vpack.c.bf16 %v335_v53, %v335_v53 }
 0x124   :  { %696 = vmatmul.mubr.bf16.vlgmr.msra.gmra.mxu1 %v336_v54 }
 0x1e4   :  { %v440_v58 = vpop.f32.mrf.mxu1 }
 0x1e5   :  { %v441_v60 = vadd.f32 %v604_v57, %v440_v58 }
 0x1e6   :  { %v697_v61 = vpop.f32.mrf.mxu1 }
 0x1e7   :  { %vm446_vm3 = vcmp.gt.f32.partialorder %v441_v60, 0.0  ;;  %v448_v62 = vmul.f32 %v447_v59, %v441_v60 }
 0x1e8   :  { %v443_v63 = vpop.f32.mrf.mxu1 }
 0x1e9   :  { %v449_v0 = vsel %vm446_vm3, %v441_v60, %v448_v62 }
 0x1ea   :  { %v450_v1 = vpack.c.bf16 %v449_v0, %v449_v0  ;;  %v698_v3 = vpop.f32.mrf.mxu1 }
 0x1ec   :  { %716 = vmatmul.mubr.bf16.vlgmr.msra.gmra.mxu0 %v450_v1 }
 0x2ac   :  { %v554_v5 = vpop.f32.mrf.mxu0 }
 0x2ad   :  { %v555_v2 = vadd.f32 %v613_v4, %v554_v5 }
 0x2ae   :  { %v717_v6 = vpop.f32.mrf.mxu0 }
 0x2af   :  { %560 = vst [vmem:[#allocation10] sm:$0xff] %v555_v2 }
 0x2b0   :  { %v557_v7 = vpop.f32.mrf.mxu0 }
 0x2b1   :  { %850 = shalt.err (!%p847_p10)
}
 0x2b2   :  { %570 = dma.vmem_to_hbm [thread:$0]  %s568_s10, 128, %s946_s4, [#allocation4]   ;;  %v718_v8 = vpop.f32.mrf.mxu0 }
 0x2b3   :  { %865 = dma.done.wait [#allocation4], 128  }
 0x2b4   :  { %866 = vsyncadd [#allocation4], 4294967168 }
 0x2b5   :  { %574 = vsyncpa [#allocation3], 1 }
 0x2b6   :  { %575 = vsyncpa [#allocation7], 1 }
 0x2b7   :  { %576 = vsyncpa [#allocation4], 1 }
 0x2b8   :  { %577 = vsyncpa [#allocation5], 1 }

</bundles_post_ra>
